<compile_context>
chip_gen: v7x
topology: tpu7x:2x2x1
jax: 0.10.0
libtpu: 0.0.40
codegen_flags: <defaults>
</compile_context>

<pallas_src>
import functools

import jax
import jax.numpy as jnp
from jax.experimental import pallas as pl
from jax.experimental.pallas import tpu as pltpu


def _round_up(a, b):
    return (a + b - 1) // b * b


def _sobel_kernel(x_ref, mask_ref, gx_ref, gy_ref, xpad_ref, *, H, W, L):
    """One block of `bp` planes, each flattened to H*W lanes.

    x_ref    : (bp, H*W)       input planes (any float dtype)
    mask_ref : (2,  H*W) f32   row 0: 0 at column j==0, else 1
                               row 1: 0 at column j==W-1, else 1
    gx_ref   : (bp, H*W)       xsobel response
    gy_ref   : (bp, H*W)       ysobel response
    xpad_ref : (bp, L + H*W + L) f32 scratch; interior at lane offset L
               (L is a multiple of 128 >= W+1, so the interior store is
               lane-aligned and the halos provide the padding=1 zeros).
    """
    HW = H * W
    bp = x_ref.shape[0]

    # Zero the halo bands every step (cheap VMEM-only stores; safe under
    # megacore splitting of the parallel grid axis), then drop the plane data
    # into the interior.
    xpad_ref[:, 0:L] = jnp.zeros((bp, L), jnp.float32)
    xpad_ref[:, L + HW:L + HW + L] = jnp.zeros((bp, L), jnp.float32)
    xpad_ref[:, L:L + HW] = x_ref[...].astype(jnp.float32)

    m_l = mask_ref[0:1, :]  # kills wrapped-around "j-1" terms at the left edge
    m_r = mask_ref[1:2, :]  # kills wrapped-around "j+1" terms at the right edge

    def sl(off):
        # x[i + di, j + dj] for all (i, j) == flat shift by di*W + dj.
        return xpad_ref[:, L + off:L + off + HW]

    a_tl = sl(-W - 1) * m_l   # x[i-1, j-1]
    a_t  = sl(-W)             # x[i-1, j  ]
    a_tr = sl(-W + 1) * m_r   # x[i-1, j+1]
    a_l  = sl(-1) * m_l       # x[i  , j-1]
    a_r  = sl(+1) * m_r       # x[i  , j+1]
    a_bl = sl(W - 1) * m_l    # x[i+1, j-1]
    a_b  = sl(W)              # x[i+1, j  ]
    a_br = sl(W + 1) * m_r    # x[i+1, j+1]

    gx = (a_tl + 2.0 * a_l + a_bl) - (a_tr + 2.0 * a_r + a_br)   # xsobel
    gy = (a_tl + 2.0 * a_t + a_tr) - (a_bl + 2.0 * a_b + a_br)   # ysobel

    gx_ref[...] = gx.astype(gx_ref.dtype)
    gy_ref[...] = gy.astype(gy_ref.dtype)


def _vmem_capacity_bytes():
    try:
        cap = getattr(pltpu.get_tpu_info(), "vmem_capacity_bytes", None)
        if cap:
            return int(cap)
    except Exception:
        pass
    return 64 * 1024 * 1024  # conservative fallback: v7x per-TensorCore VMEM


def channelwise_sobel(x, *, block_planes=None):
    """x: (n, c, h, w). Returns (gx, gy), each (n, c, h, w), dtype of x."""
    n, c, h, w = x.shape
    nc, hw = n * c, h * w
    itemsize = jnp.dtype(x.dtype).itemsize

    # Free reshape: planes are independent; flattening (h, w) -> h*w keeps the
    # HBM layout identical and makes the last dim lane-dense even for small w.
    xf = x.reshape(nc, hw)

    # Halo width: multiple of 128 (so the interior scratch store is aligned)
    # and >= w + 1 (covers the row above / below plus the corner shifts).
    lpad = _round_up(w + 1, 128)

    # Generation-aware VMEM limit (~3/4 of per-core capacity: ~48 MiB on v7x,
    # ~96 MiB on v5e/v6e).
    vmem_limit = min((_vmem_capacity_bytes() * 3) // 4, 112 * 1024 * 1024)

    if block_planes is None:
        # Resident VMEM per plane per grid step:
        #   double-buffered input block + 2 outputs x 2 buffers
        #   + f32 halo scratch + ~16 full-block f32 temporaries/slices.
        per_plane = hw * (2 * itemsize + 4 * itemsize + 4 + 16 * 4) + 8 * lpad
        budget = vmem_limit // 3
        bp = max(1, budget // per_plane)
        # Keep >= ~8 grid steps when the plane count allows it: shards the
        # parallel axis across both TensorCores (v7x) and keeps the DMA
        # pipeline busy.
        bp = min(bp, pl.cdiv(nc, 8))
        if nc <= 8:
            bp = nc                      # block == full plane axis (always legal)
        else:
            bp = max(8, (bp // 8) * 8)   # sublane tile: multiple of 8
            bp = min(bp, nc)
    else:
        bp = int(block_planes)
        assert 1 <= bp <= nc

    grid = pl.cdiv(nc, bp)  # bp need not divide nc: the last block is partial/masked

    # {0,1} edge-column masks for the flattened +/-1 lane shifts (a horizontal
    # shift wraps across the row boundary in the flattened layout). Tiny; the
    # block index is constant across the grid so it is fetched once.
    col = jnp.tile(jnp.arange(w, dtype=jnp.int32), h)                       # (hw,)
    masks = jnp.stack([col != 0, col != (w - 1)]).astype(jnp.float32)       # (2, hw)

    kernel = functools.partial(_sobel_kernel, H=h, W=w, L=lpad)

    gx, gy = pl.pallas_call(
        kernel,
        out_shape=(
            jax.ShapeDtypeStruct((nc, hw), x.dtype),
            jax.ShapeDtypeStruct((nc, hw), x.dtype),
        ),
        grid_spec=pltpu.PrefetchScalarGridSpec(
            num_scalar_prefetch=0,
            grid=(grid,),
            in_specs=[
                pl.BlockSpec((bp, hw), lambda i: (i, 0)),
                pl.BlockSpec((2, hw), lambda i: (0, 0)),
            ],
            out_specs=[
                pl.BlockSpec((bp, hw), lambda i: (i, 0)),
                pl.BlockSpec((bp, hw), lambda i: (i, 0)),
            ],
            scratch_shapes=[pltpu.VMEM((bp, hw + 2 * lpad), jnp.float32)],
        ),
        compiler_params=pltpu.CompilerParams(
            dimension_semantics=("parallel",),
            vmem_limit_bytes=int(vmem_limit),
        ),
    )(xf, masks)

    return gx.reshape(n, c, h, w), gy.reshape(n, c, h, w)


if __name__ == "__main__":
    key = jax.random.PRNGKey(0)
    n, c, h, w = 2, 4, 16, 16
    x = jax.random.normal(key, (n, c, h, w), dtype=jnp.float32)

    gx, gy = channelwise_sobel(x)
    gx = jax.block_until_ready(gx)
    gy = jax.block_until_ready(gy)

    # Independent reference: depthwise cross-correlation via lax.conv.
    xsobel = jnp.array([[1, 0, -1], [2, 0, -2], [1, 0, -1]], dtype=jnp.float32)
    ysobel = jnp.array([[1, 2, 1], [0, 0, 0], [-1, -2, -1]], dtype=jnp.float32)
    wx = jnp.tile(xsobel[None, None], (c, 1, 1, 1))   # (c, 1, 3, 3)
    wy = jnp.tile(ysobel[None, None], (c, 1, 1, 1))
    conv = functools.partial(
        jax.lax.conv_general_dilated,
        window_strides=(1, 1),
        padding=((1, 1), (1, 1)),
        dimension_numbers=("NCHW", "OIHW", "NCHW"),
        feature_group_count=c,
    )
    ref_gx = conv(x, wx)
    ref_gy = conv(x, wy)

    assert jnp.allclose(gx, ref_gx, rtol=1e-5, atol=1e-4), "gx mismatch"
    assert jnp.allclose(gy, ref_gy, rtol=1e-5, atol=1e-4), "gy mismatch"

    print("KERNEL_OK")
</pallas_src>

<mosaic_0001>
module attributes {stable_mosaic.version = 11 : i64} {
  func.func @_sobel_kernel(%arg0: i32, %arg1: memref<8x256xf32, #tpu.memory_space<vmem>>, %arg2: memref<2x256xf32, #tpu.memory_space<vmem>>, %arg3: memref<8x256xf32, #tpu.memory_space<vmem>>, %arg4: memref<8x256xf32, #tpu.memory_space<vmem>>, %arg5: memref<8x512xf32, #tpu.memory_space<vmem>>) attributes {dimension_semantics = [#tpu.dimension_semantics<parallel>], iteration_bounds = array<i64: 1>, scalar_prefetch = 0 : i64, scratch_operands = 1 : i64, tpu.core_type = #tpu.core_type<tc>, window_params = [{transform_indices = @transform_0, window_bounds = array<i64: 8, 256>}, {pipeline_mode = #tpu.pipeline_mode<synchronous>, transform_indices = @transform_1, window_bounds = array<i64: 2, 256>}, {transform_indices = @transform_2, window_bounds = array<i64: 8, 256>}, {transform_indices = @transform_3, window_bounds = array<i64: 8, 256>}]} {
    %cst = arith.constant 0.000000e+00 : f32
    %0 = vector.broadcast %cst : f32 to vector<8x128xf32>
    %c0 = arith.constant 0 : index
    %c0_0 = arith.constant 0 : index
    %1 = vector.load %arg5[%c0, %c0_0] : memref<8x512xf32, #tpu.memory_space<vmem>>, vector<8x128xf32>
    tpu.vector_store %arg5[%c0, %c0_0], %0 {strides = array<i32>} : memref<8x512xf32, #tpu.memory_space<vmem>>, vector<8x128xf32>,
    %cst_1 = arith.constant 0.000000e+00 : f32
    %2 = vector.broadcast %cst_1 : f32 to vector<8x128xf32>
    %c0_2 = arith.constant 0 : index
    %c384 = arith.constant 384 : index
    %3 = vector.load %arg5[%c0_2, %c384] : memref<8x512xf32, #tpu.memory_space<vmem>>, vector<8x128xf32>
    tpu.vector_store %arg5[%c0_2, %c384], %2 {strides = array<i32>} : memref<8x512xf32, #tpu.memory_space<vmem>>, vector<8x128xf32>,
    %c0_3 = arith.constant 0 : index
    %c0_4 = arith.constant 0 : index
    %4 = vector.load %arg1[%c0_3, %c0_4] : memref<8x256xf32, #tpu.memory_space<vmem>>, vector<8x256xf32>
    %c0_5 = arith.constant 0 : index
    %c128 = arith.constant 128 : index
    %5 = vector.load %arg5[%c0_5, %c128] : memref<8x512xf32, #tpu.memory_space<vmem>>, vector<8x256xf32>
    tpu.vector_store %arg5[%c0_5, %c128], %4 {strides = array<i32>} : memref<8x512xf32, #tpu.memory_space<vmem>>, vector<8x256xf32>,
    %c0_6 = arith.constant 0 : index
    %c0_7 = arith.constant 0 : index
    %6 = vector.load %arg2[%c0_6, %c0_7] : memref<2x256xf32, #tpu.memory_space<vmem>>, vector<1x256xf32>
    %c1 = arith.constant 1 : index
    %c0_8 = arith.constant 0 : index
    %7 = vector.load %arg2[%c1, %c0_8] : memref<2x256xf32, #tpu.memory_space<vmem>>, vector<1x256xf32>
    %c0_9 = arith.constant 0 : index
    %c111 = arith.constant 111 : index
    %8 = vector.load %arg5[%c0_9, %c111] : memref<8x512xf32, #tpu.memory_space<vmem>>, vector<8x256xf32>
    %9 = vector.broadcast %6 : vector<1x256xf32> to vector<8x256xf32>
    %10 = arith.mulf %8, %9 : vector<8x256xf32>
    %c0_10 = arith.constant 0 : index
    %c112 = arith.constant 112 : index
    %11 = vector.load %arg5[%c0_10, %c112] : memref<8x512xf32, #tpu.memory_space<vmem>>, vector<8x256xf32>
    %c0_11 = arith.constant 0 : index
    %c113 = arith.constant 113 : index
    %12 = vector.load %arg5[%c0_11, %c113] : memref<8x512xf32, #tpu.memory_space<vmem>>, vector<8x256xf32>
    %13 = vector.broadcast %7 : vector<1x256xf32> to vector<8x256xf32>
    %14 = arith.mulf %12, %13 : vector<8x256xf32>
    %c0_12 = arith.constant 0 : index
    %c127 = arith.constant 127 : index
    %15 = vector.load %arg5[%c0_12, %c127] : memref<8x512xf32, #tpu.memory_space<vmem>>, vector<8x256xf32>
    %16 = vector.broadcast %6 : vector<1x256xf32> to vector<8x256xf32>
    %17 = arith.mulf %15, %16 : vector<8x256xf32>
    %c0_13 = arith.constant 0 : index
    %c129 = arith.constant 129 : index
    %18 = vector.load %arg5[%c0_13, %c129] : memref<8x512xf32, #tpu.memory_space<vmem>>, vector<8x256xf32>
    %19 = vector.broadcast %7 : vector<1x256xf32> to vector<8x256xf32>
    %20 = arith.mulf %18, %19 : vector<8x256xf32>
    %c0_14 = arith.constant 0 : index
    %c143 = arith.constant 143 : index
    %21 = vector.load %arg5[%c0_14, %c143] : memref<8x512xf32, #tpu.memory_space<vmem>>, vector<8x256xf32>
    %22 = vector.broadcast %6 : vector<1x256xf32> to vector<8x256xf32>
    %23 = arith.mulf %21, %22 : vector<8x256xf32>
    %c0_15 = arith.constant 0 : index
    %c144 = arith.constant 144 : index
    %24 = vector.load %arg5[%c0_15, %c144] : memref<8x512xf32, #tpu.memory_space<vmem>>, vector<8x256xf32>
    %c0_16 = arith.constant 0 : index
    %c145 = arith.constant 145 : index
    %25 = vector.load %arg5[%c0_16, %c145] : memref<8x512xf32, #tpu.memory_space<vmem>>, vector<8x256xf32>
    %26 = vector.broadcast %7 : vector<1x256xf32> to vector<8x256xf32>
    %27 = arith.mulf %25, %26 : vector<8x256xf32>
    %cst_17 = arith.constant 2.000000e+00 : f32
    %28 = vector.broadcast %cst_17 : f32 to vector<8x256xf32>
    %29 = arith.mulf %28, %17 : vector<8x256xf32>
    %30 = arith.addf %10, %29 : vector<8x256xf32>
    %31 = arith.addf %30, %23 : vector<8x256xf32>
    %cst_18 = arith.constant 2.000000e+00 : f32
    %32 = vector.broadcast %cst_18 : f32 to vector<8x256xf32>
    %33 = arith.mulf %32, %20 : vector<8x256xf32>
    %34 = arith.addf %14, %33 : vector<8x256xf32>
    %35 = arith.addf %34, %27 : vector<8x256xf32>
    %36 = arith.subf %31, %35 : vector<8x256xf32>
    %cst_19 = arith.constant 2.000000e+00 : f32
    %37 = vector.broadcast %cst_19 : f32 to vector<8x256xf32>
    %38 = arith.mulf %37, %11 : vector<8x256xf32>
    %39 = arith.addf %10, %38 : vector<8x256xf32>
    %40 = arith.addf %39, %14 : vector<8x256xf32>
    %cst_20 = arith.constant 2.000000e+00 : f32
    %41 = vector.broadcast %cst_20 : f32 to vector<8x256xf32>
    %42 = arith.mulf %41, %24 : vector<8x256xf32>
    %43 = arith.addf %23, %42 : vector<8x256xf32>
    %44 = arith.addf %43, %27 : vector<8x256xf32>
    %45 = arith.subf %40, %44 : vector<8x256xf32>
    %c0_21 = arith.constant 0 : index
    %c0_22 = arith.constant 0 : index
    %46 = vector.load %arg3[%c0_21, %c0_22] : memref<8x256xf32, #tpu.memory_space<vmem>>, vector<8x256xf32>
    tpu.vector_store %arg3[%c0_21, %c0_22], %36 {strides = array<i32>} : memref<8x256xf32, #tpu.memory_space<vmem>>, vector<8x256xf32>,
    %c0_23 = arith.constant 0 : index
    %c0_24 = arith.constant 0 : index
    %47 = vector.load %arg4[%c0_23, %c0_24] : memref<8x256xf32, #tpu.memory_space<vmem>>, vector<8x256xf32>
    tpu.vector_store %arg4[%c0_23, %c0_24], %45 {strides = array<i32>} : memref<8x256xf32, #tpu.memory_space<vmem>>, vector<8x256xf32>,
    return
  }
  func.func @transform_0(%arg0: i32) -> (i32, i32) {
    %c0_i32 = arith.constant 0 : i32
    %c0_i32_0 = arith.constant 0 : i32
    return %arg0, %c0_i32 : i32, i32
  }
  func.func @transform_1(%arg0: i32) -> (i32, i32) {
    %c0_i32 = arith.constant 0 : i32
    %c0_i32_0 = arith.constant 0 : i32
    %c0_i32_1 = arith.constant 0 : i32
    return %c0_i32, %c0_i32_0 : i32, i32
  }
  func.func @transform_2(%arg0: i32) -> (i32, i32) {
    %c0_i32 = arith.constant 0 : i32
    %c0_i32_0 = arith.constant 0 : i32
    return %arg0, %c0_i32 : i32, i32
  }
  func.func @transform_3(%arg0: i32) -> (i32, i32) {
    %c0_i32 = arith.constant 0 : i32
    %c0_i32_0 = arith.constant 0 : i32
    return %arg0, %c0_i32 : i32, i32
  }
}

</mosaic_0001>

<bundles_post_ra>
// kernel: tpu_custom_call.1
= control target key start
LH: loop header
LB: loop body
LE: loop exit
PB: predicated region body
PF: predicated region fallthrough
CT: control target
= control target key end

     0   :  { %9 = vsyncpa [#allocation4], 0  ;;  %s662_s0 = inlined_call_operand.hbm [shape: f32[8,256], index: 0, kind: input, shape index: {}]   ;;  %s663_s1 = inlined_call_operand.hbm [shape: f32[2,256], index: 1, kind: input, shape index: {}]   ;;  %s664_s2 = inlined_call_operand.hbm [shape: f32[8,256], index: 2, kind: output, shape index: {0}]   ;;  %s665_s3 = inlined_call_operand.hbm [shape: f32[8,256], index: 3, kind: output, shape index: {1}]  }
   0x1   :  { %10 = vsyncpa [#allocation7], 0 }
   0x2   :  { %11 = vsyncpa [#allocation5], 0 }
   0x3   :  { %12 = vsyncpa [#allocation10], 0  ;;  %s496_s12 = smov [#allocation3]   ;;  %s497_s14 = smov [#allocation6]  }
   0x4   :  { %s19_s13 = sshll.u32 %s496_s12, 4  ;;  %s29_s15 = sshll.u32 %s497_s14, 4  ;;  %s20_s13 = int_to_ptr.vmem [resolvable:$true] %s19_s13  ;;  %s30_s15 = int_to_ptr.vmem [resolvable:$true] %s29_s15 }
   0x5   :  { %s400_s18 = scalar_lea.hbm %s662_s0, 256 }
   0x6   :  { %p401_p0 = scmp.ne.s32.totalorder %s662_s0, %s400_s18  ;;  %p404_p1 = scmp.lt.u32.totalorder %s400_s18, %s662_s0 }
   0x8   :  { %p406_p2 = pnand %p404_p1, %p401_p0 }
   0xa   :  { %409 = shalt.err (!%p406_p2)
}
   0xb   :  { %s410_s23 = scalar_lea.vmem %s20_s13, 256  ;;  %p415_p4 = scmp.lt.s32.totalorder %s20_s13, %s20_s13 }
   0xc   :  { %p411_p3 = scmp.ne.s32.totalorder %s20_s13, %s410_s23  ;;  %p416_p5 = scmp.lt.s32.totalorder %s410_s23, %s410_s23 }
   0xe   :  { %p417_p6 = por %p416_p5, %p415_p4 }
  0x10   :  { %p418_p7 = pnand %p417_p6, %p411_p3 }
  0x12   :  { %421 = shalt.err (!%p418_p7)
}
  0x13   :  { %22 = dma.hbm_to_vmem [thread:$0]  %s662_s0, 256, %s20_s13, [#allocation4]  }
  0x14   :  { %s422_s28 = scalar_lea.hbm %s663_s1, 64 }
  0x15   :  { %p423_p8 = scmp.ne.s32.totalorder %s663_s1, %s422_s28  ;;  %p426_p9 = scmp.lt.u32.totalorder %s422_s28, %s663_s1 }
  0x17   :  { %p428_p10 = pnand %p426_p9, %p423_p8 }
  0x19   :  { %431 = shalt.err (!%p428_p10)
}
  0x1a   :  { %s432_s6 = scalar_lea.vmem %s30_s15, 64  ;;  %p437_p12 = scmp.lt.s32.totalorder %s30_s15, %s30_s15 }
  0x1b   :  { %p433_p11 = scmp.ne.s32.totalorder %s30_s15, %s432_s6  ;;  %p438_p13 = scmp.lt.s32.totalorder %s432_s6, %s432_s6 }
  0x1d   :  { %p439_p0 = por %p438_p13, %p437_p12 }
  0x1f   :  { %p440_p1 = pnand %p439_p0, %p433_p11 }
  0x21   :  { %443 = shalt.err (!%p440_p1)
}
  0x22   :  { %32 = dma.hbm_to_vmem [thread:$0]  %s663_s1, 64, %s30_s15, [#allocation7]  }
  0x23   :  { %488 = dma.done.wait [#allocation4], 256  }
  0x24   :  { %489 = vsyncadd [#allocation4], 4294967040 }
  0x25   :  { %490 = dma.done.wait [#allocation7], 64  }
  0x26   :  { %491 = vsyncadd [#allocation7], 4294967232  ;;  %v52_v0 = vlaneseq  ;;  %v47_v4 = vld [vmem:[#allocation6 + $0x1] ss:$2 sm:$0x3]  ;;  %s498_s8 = smov 17  }
  0x27   :  { %s499_s9 = smov 1   ;;  %v45_v7 = vld [vmem:[#allocation6] ss:$2 sm:$0x3]  ;;  %s500_s1 = smov 127   ;;  %v558_v10 = vld [vmem:[#allocation3] sm:$0xff] }
  0x28   :  { %v53_v1 = vshrl.u32 %v52_v0, 7  ;;  %s501_s10 = smov 113   ;;  %v560_v11 = vld [vmem:[#allocation3 + $0x8] sm:$0xff]  ;;  %s502_s11 = smov 15   ;;  %v239_v12 = vmul.f32 2.0, %v558_v10  ;;  %v503_v14 = vmov 0.0  }
  0x29   :  { %v240_v13 = vmul.f32 2.0, %v560_v11  ;;  %vm136_vm0 = vcmask 138240   ;;  %vm112_vm1 = vcmask 7168   ;;  %s504_s12 = smov 126   ;;  %s505_s13 = smov 96   ;;  %vm124_vm2 = vcmask 121856  }
  0x2a   :  { %v54_v2 = vsub.s32 0, %v53_v1  ;;  %v58_v3 = vsub.s32 1, %v53_v1  ;;  %s506_s14 = smov 112   ;;  %s507_s15 = smov 111   ;;  %vm97_vm3 = vcmask 1039360   ;;  %vm85_vm4 = vcmask 924672  }
  0x2b   :  { %vm174_vm5 = vcmask 785408   ;;  %vm156_vm6 = vcmask 916480   ;;  %vm229_vm7 = vcmask 1031168   ;;  %vm64_vm8 = vcmask 908288   ;;  %s508_s16 = smov [#allocation8]   ;;  %s509_s18 = smov [#allocation9]  }
  0x2c   :  { %v76_v5 = vrot.slane %v47_v4, %v54_v2  ;;  %v80_v6 = vrot.slane %v47_v4, %v58_v3  ;;  %v59_v8 = vrot.slane %v45_v7, %v58_v3  ;;  %v55_v9 = vrot.slane %v45_v7, %v54_v2  ;;  %s362_s17 = sshll.u32 %s508_s16, 4  ;;  %s372_s19 = sshll.u32 %s509_s18, 4  ;;  %s363_s17 = int_to_ptr.vmem [resolvable:$true] %s362_s17  ;;  %s373_s19 = int_to_ptr.vmem [resolvable:$true] %s372_s19 }
  0x2d   :  { %s444_s20 = scalar_lea.vmem %s363_s17, 256  ;;  %p449_p3 = scmp.lt.s32.totalorder %s363_s17, %s363_s17 }
  0x2e   :  { %132 = vrot.lane.b32.xlu1 %v76_v5, %s498_s8  ;;  %108 = vrot.lane.b32.xlu0 %v76_v5, %s499_s9  ;;  %p445_p2 = scmp.ne.s32.totalorder %s363_s17, %s444_s20  ;;  %p450_p4 = scmp.lt.s32.totalorder %s444_s20, %s444_s20 }
  0x30   :  { %p451_p5 = por %p450_p4, %p449_p3 }
  0x32   :  { %134 = vrot.lane.b32.xlu1 %v80_v6, %s498_s8  ;;  %110 = vrot.lane.b32.xlu0 %v80_v6, %s499_s9  ;;  %p452_p6 = pnand %p451_p5, %p445_p2 }
  0x36   :  { %95 = vrot.lane.b32.xlu1 %v59_v8, %s500_s1  ;;  %93 = vrot.lane.b32.xlu0 %v55_v9, %s500_s1 }
  0x3a   :  { %83 = vrot.lane.b32.xlu1 %v80_v6, %s501_s10  ;;  %81 = vrot.lane.b32.xlu0 %v76_v5, %s501_s10 }
  0x3e   :  { %122 = vrot.lane.b32.xlu1 %v59_v8, %s502_s11  ;;  %120 = vrot.lane.b32.xlu0 %v55_v9, %s502_s11 }
  0x42   :  { %281 = vrot.lane.b32.xlu1 %v239_v12, %s500_s1  ;;  %283 = vrot.lane.b32.xlu0 %v240_v13, %s500_s1 }
  0x46   :  { %285 = vrot.lane.b32.xlu1 %v503_v14, %s500_s1 }
  0xa0   :  { %v133_v15 = vpop.permute.xlu1 %132  ;;  %v109_v16 = vpop.permute.xlu0 %108 }
  0xa1   :  { %v141_v17 = vmul.f32 %v133_v15, %v558_v10  ;;  %v117_v18 = vmul.f32 %v109_v16, %v558_v10 }
  0xa3   :  { %295 = vrot.lane.b32.xlu1 %v141_v17, %s504_s12  ;;  %206 = vrot.lane.b32.xlu0 %v141_v17, %s505_s13  ;;  %v183_v26 = vmul.f32 2.0, %v117_v18 }
  0xa4   :  { %v135_v19 = vpop.permute.xlu1 %134  ;;  %v111_v20 = vpop.permute.xlu0 %110 }
  0xa5   :  { %v137_v21 = vsel %vm136_vm0, %v133_v15, %v135_v19  ;;  %v143_v22 = vmul.f32 0.0, %v135_v19  ;;  %v113_v23 = vsel %vm112_vm1, %v109_v16, %v111_v20  ;;  %v119_v27 = vmul.f32 0.0, %v111_v20 }
  0xa6   :  { %v142_v24 = vmul.f32 %v137_v21, %v560_v11  ;;  %v118_v25 = vmul.f32 %v113_v23, %v560_v11 }
  0xa7   :  { %210 = vrot.lane.b32.xlu0 %v143_v22, %s505_s13  ;;  %v185_v31 = vmul.f32 2.0, %v119_v27 }
  0xa8   :  { %v184_v28 = vmul.f32 2.0, %v118_v25  ;;  %208 = vrot.lane.b32.xlu1 %v142_v24, %s505_s13  ;;  %v96_v29 = vpop.permute.xlu1 %95  ;;  %v94_v30 = vpop.permute.xlu0 %93 }
  0xa9   :  { %v102_v34 = vmul.f32 0.0, %v94_v30  ;;  %v104_v37 = vmul.f32 %v96_v29, %v560_v11  ;;  %v98_v43 = vsel %vm97_vm3, %v94_v30, %v96_v29 }
  0xaa   :  { %v103_v45 = vmul.f32 %v98_v43, %v558_v10 }
  0xab   :  { %189 = vrot.lane.b32.xlu0 %v183_v26, %s506_s14  ;;  %v144_v38 = vmul.f32 2.0, %v102_v34  ;;  %v146_v40 = vmul.f32 2.0, %v104_v37 }
  0xac   :  { %191 = vrot.lane.b32.xlu1 %v184_v28, %s506_s14  ;;  %v84_v32 = vpop.permute.xlu1 %83  ;;  %v82_v33 = vpop.permute.xlu0 %81  ;;  %v145_v48 = vmul.f32 2.0, %v103_v45 }
  0xad   :  { %v90_v42 = vmul.f32 0.0, %v82_v33  ;;  %v92_v46 = vmul.f32 %v84_v32, %v560_v11  ;;  %v86_v49 = vsel %vm85_vm4, %v82_v33, %v84_v32 }
  0xae   :  { %v91_v50 = vmul.f32 %v86_v49, %v558_v10 }
  0xaf   :  { %193 = vrot.lane.b32.xlu0 %v185_v31, %s506_s14 }
  0xb0   :  { %299 = vrot.lane.b32.xlu1 %v143_v22, %s504_s12  ;;  %v123_v35 = vpop.permute.xlu1 %122  ;;  %v121_v36 = vpop.permute.xlu0 %120 }
  0xb1   :  { %v125_v39 = vsel %vm124_vm2, %v121_v36, %v123_v35  ;;  %v129_v44 = vmul.f32 %v121_v36, %v558_v10  ;;  %v131_v47 = vmul.f32 0.0, %v123_v35 }
  0xb2   :  { %v130_v41 = vmul.f32 %v125_v39, %v560_v11 }
  0xb3   :  { %297 = vrot.lane.b32.xlu0 %v142_v24, %s504_s12 }
  0xb4   :  { %62 = vrot.lane.b32.xlu1 %v59_v8, %s507_s15  ;;  %v282_v51 = vpop.permute.xlu1 %281  ;;  %v284_v52 = vpop.permute.xlu0 %283 }
  0xb5   :  { %v287_v63 = vsel %vm97_vm3, %v282_v51, %v284_v52 }
  0xb6   :  { %v292_v5 = vadd.f32 %v287_v63, %v129_v44 }
  0xb7   :  { %60 = vrot.lane.b32.xlu0 %v55_v9, %s507_s15 }
  0xb8   :  { %244 = vrot.lane.b32.xlu1 %v503_v14, %s500_s1  ;;  %v286_v53 = vpop.permute.xlu1 %285 }
  0xb9   :  { %v288_v2 = vsel %vm97_vm3, %v284_v52, %v286_v53  ;;  %v294_v19 = vadd.f32 %v286_v53, %v131_v47 }
  0xbb   :  { %150 = vrot.lane.b32.xlu0 %v144_v38, %s506_s14 }
  0xbc   :  { %248 = vrot.lane.b32.xlu1 %v240_v13, %s500_s1  ;;  %v293_v13 = vadd.f32 %v288_v2, %v130_v41 }
  0xbf   :  { %154 = vrot.lane.b32.xlu0 %v146_v40, %s506_s14 }
  0xc0   :  { %170 = vrot.lane.b32.xlu1 %v130_v41, %s505_s13 }
  0xc3   :  { %246 = vrot.lane.b32.xlu0 %v239_v12, %s500_s1 }
  0xc4   :  { %261 = vrot.lane.b32.xlu1 %v90_v42, %s504_s12 }
  0xc7   :  { %168 = vrot.lane.b32.xlu0 %v129_v44, %s505_s13 }
  0xc8   :  { %265 = vrot.lane.b32.xlu1 %v92_v46, %s504_s12 }
  0xcb   :  { %172 = vrot.lane.b32.xlu0 %v131_v47, %s505_s13 }
  0xcc   :  { %152 = vrot.lane.b32.xlu1 %v145_v48, %s506_s14 }
  0xcf   :  { %263 = vrot.lane.b32.xlu0 %v91_v50, %s504_s12 }
 0x115   :  { %v296_v54 = vpop.permute.xlu1 %295  ;;  %v207_v55 = vpop.permute.xlu0 %206 }
 0x119   :  { %v211_v56 = vpop.permute.xlu0 %210 }
 0x11a   :  { %v209_v57 = vpop.permute.xlu1 %208 }
 0x11b   :  { %v213_v3 = vsel %vm174_vm5, %v209_v57, %v211_v56  ;;  %v212_v17 = vsel %vm174_vm5, %v207_v55, %v209_v57 }
 0x11d   :  { %v190_v58 = vpop.permute.xlu0 %189 }
 0x11e   :  { %v200_v59 = vadd.f32 %v190_v58, %v90_v42  ;;  %v192_v60 = vpop.permute.xlu1 %191 }
 0x11f   :  { %v195_v4 = vsel %vm156_vm6, %v190_v58, %v192_v60 }
 0x120   :  { %v217_v61 = vadd.f32 %v207_v55, %v200_v59  ;;  %v201_v14 = vadd.f32 %v195_v4, %v91_v50 }
 0x121   :  { %v194_v62 = vpop.permute.xlu0 %193 }
 0x122   :  { %v196_v0 = vsel %vm156_vm6, %v192_v60, %v194_v62  ;;  %223 = vrot.lane.b32.xlu0 %v217_v61, %s504_s12  ;;  %v300_v6 = vpop.permute.xlu1 %299  ;;  %v218_v18 = vadd.f32 %v212_v17, %v201_v14 }
 0x123   :  { %v202_v1 = vadd.f32 %v196_v0, %v92_v46  ;;  %v308_v20 = vadd.f32 %v300_v6, %v294_v19 }
 0x125   :  { %v298_v7 = vpop.permute.xlu0 %297  ;;  %v219_v8 = vadd.f32 %v213_v3, %v202_v1 }
 0x126   :  { %v301_v9 = vsel %vm229_vm7, %v296_v54, %v298_v7  ;;  %v302_v12 = vsel %vm229_vm7, %v298_v7, %v300_v6  ;;  %v63_v22 = vpop.permute.xlu1 %62 }
 0x127   :  { %v306_v15 = vadd.f32 %v301_v9, %v292_v5  ;;  %227 = vrot.lane.b32.xlu0 %v219_v8, %s504_s12  ;;  %v307_v16 = vadd.f32 %v302_v12, %v293_v13  ;;  %v71_v33 = vmul.f32 %v63_v22, %v560_v11 }
 0x129   :  { %312 = vrot.lane.b32.xlu1 %v306_v15, %s505_s13  ;;  %v61_v21 = vpop.permute.xlu0 %60 }
 0x12a   :  { %v245_v24 = vpop.permute.xlu1 %244  ;;  %v69_v35 = vmul.f32 0.0, %v61_v21  ;;  %v65_v37 = vsel %vm64_vm8, %v61_v21, %v63_v22 }
 0x12b   :  { %314 = vrot.lane.b32.xlu0 %v307_v16, %s505_s13  ;;  %v70_v43 = vmul.f32 %v65_v37, %v558_v10 }
 0x12d   :  { %225 = vrot.lane.b32.xlu1 %v218_v18, %s504_s12  ;;  %v151_v23 = vpop.permute.xlu0 %150 }
 0x12e   :  { %v249_v26 = vpop.permute.xlu1 %248 }
 0x12f   :  { %v257_v10 = vadd.f32 %v249_v26, %v71_v33 }
 0x131   :  { %316 = vrot.lane.b32.xlu1 %v308_v20, %s505_s13  ;;  %v155_v25 = vpop.permute.xlu0 %154 }
 0x132   :  { %v171_v28 = vpop.permute.xlu1 %170  ;;  %v164_v38 = vadd.f32 %v155_v25, %v71_v33 }
 0x135   :  { %v247_v27 = vpop.permute.xlu0 %246 }
 0x136   :  { %v262_v30 = vpop.permute.xlu1 %261  ;;  %v250_v36 = vsel %vm97_vm3, %v245_v24, %v247_v27  ;;  %v251_v53 = vsel %vm97_vm3, %v247_v27, %v249_v26 }
 0x137   :  { %v255_v42 = vadd.f32 %v250_v36, %v69_v35  ;;  %v256_v56 = vadd.f32 %v251_v53, %v70_v43 }
 0x139   :  { %v169_v29 = vpop.permute.xlu0 %168 }
 0x13a   :  { %v266_v32 = vpop.permute.xlu1 %265  ;;  %v175_v54 = vsel %vm174_vm5, %v169_v29, %v171_v28 }
 0x13b   :  { %v274_v3 = vadd.f32 %v266_v32, %v257_v10 }
 0x13d   :  { %v173_v31 = vpop.permute.xlu0 %172 }
 0x13e   :  { %v176_v40 = vsel %vm174_vm5, %v171_v28, %v173_v31  ;;  %v153_v41 = vpop.permute.xlu1 %152 }
 0x13f   :  { %v182_v45 = vadd.f32 %v176_v40, %v164_v38  ;;  %v157_v46 = vsel %vm156_vm6, %v151_v23, %v153_v41  ;;  %v158_v11 = vsel %vm156_vm6, %v153_v41, %v155_v25 }
 0x140   :  { %v162_v50 = vadd.f32 %v157_v46, %v69_v35  ;;  %v163_v51 = vadd.f32 %v158_v11, %v70_v43 }
 0x141   :  { %v264_v34 = vpop.permute.xlu0 %263 }
 0x142   :  { %v267_v44 = vsel %vm229_vm7, %v262_v30, %v264_v34  ;;  %v180_v58 = vadd.f32 %v169_v29, %v162_v50  ;;  %v181_v59 = vadd.f32 %v175_v54, %v163_v51  ;;  %v268_v61 = vsel %vm229_vm7, %v264_v34, %v266_v32 }
 0x143   :  { %v272_v48 = vadd.f32 %v267_v44, %v255_v42  ;;  %v273_v4 = vadd.f32 %v268_v61, %v256_v56 }
 0x194   :  { %v224_v39 = vpop.permute.xlu0 %223 }
 0x199   :  { %v228_v47 = vpop.permute.xlu0 %227 }
 0x19a   :  { %v237_v49 = vsub.f32 %v182_v45, %v228_v47 }
 0x19b   :  { %v313_v52 = vpop.permute.xlu1 %312 }
 0x19c   :  { %v323_v55 = vsub.f32 %v272_v48, %v313_v52  ;;  %333 = vrot.lane.b32.xlu0 %v237_v49, %s498_s8 }
 0x19d   :  { %v315_v57 = vpop.permute.xlu0 %314 }
 0x19e   :  { %344 = vrot.lane.b32.xlu1 %v323_v55, %s498_s8  ;;  %v318_v2 = vsel %vm174_vm5, %v313_v52, %v315_v57 }
 0x19f   :  { %v226_v60 = vpop.permute.xlu1 %225  ;;  %v324_v7 = vsub.f32 %v273_v4, %v318_v2 }
 0x1a0   :  { %v230_v62 = vsel %vm229_vm7, %v224_v39, %v226_v60  ;;  %v231_v63 = vsel %vm229_vm7, %v226_v60, %v228_v47 }
 0x1a1   :  { %v235_v0 = vsub.f32 %v180_v58, %v230_v62  ;;  %v236_v1 = vsub.f32 %v181_v59, %v231_v63 }
 0x1a3   :  { %331 = vrot.lane.b32.xlu1 %v236_v1, %s498_s8  ;;  %329 = vrot.lane.b32.xlu0 %v235_v0, %s498_s8  ;;  %v317_v5 = vpop.permute.xlu1 %316 }
 0x1a4   :  { %v319_v6 = vsel %vm174_vm5, %v315_v57, %v317_v5 }
 0x1a5   :  { %v325_v8 = vsub.f32 %v274_v3, %v319_v6 }
 0x1a7   :  { %346 = vrot.lane.b32.xlu0 %v324_v7, %s498_s8  ;;  %348 = vrot.lane.b32.xlu1 %v325_v8, %s498_s8 }
 0x20e   :  { %v334_v12 = vpop.permute.xlu0 %333 }
 0x210   :  { %v345_v9 = vpop.permute.xlu1 %344 }
 0x215   :  { %v330_v13 = vpop.permute.xlu0 %329  ;;  %v332_v14 = vpop.permute.xlu1 %331 }
 0x216   :  { %v335_v15 = vsel %vm136_vm0, %v330_v13, %v332_v14  ;;  %v336_v16 = vsel %vm136_vm0, %v332_v14, %v334_v12 }
 0x217   :  { %339 = vst [vmem:[#allocation8] sm:$0xff] %v335_v15  ;;  %340 = vst [vmem:[#allocation8 + $0x8] sm:$0xff] %v336_v16 }
 0x218   :  { %455 = shalt.err (!%p452_p6)
}
 0x219   :  { %s456_s23 = scalar_lea.hbm %s664_s2, 256 }
 0x21a   :  { %p457_p7 = scmp.ne.s32.totalorder %s664_s2, %s456_s23  ;;  %p460_p8 = scmp.lt.u32.totalorder %s456_s23, %s664_s2 }
 0x21c   :  { %p462_p9 = pnand %p460_p8, %p457_p7 }
 0x21e   :  { %465 = shalt.err (!%p462_p9)
}
 0x21f   :  { %365 = dma.vmem_to_hbm [thread:$0]  %s363_s17, 256, %s664_s2, [#allocation5]   ;;  %v347_v17 = vpop.permute.xlu0 %346  ;;  %v349_v18 = vpop.permute.xlu1 %348 }
 0x220   :  { %v350_v19 = vsel %vm136_vm0, %v345_v9, %v347_v17  ;;  %v351_v20 = vsel %vm136_vm0, %v347_v17, %v349_v18  ;;  %s466_s30 = scalar_lea.vmem %s373_s19, 256  ;;  %p471_p11 = scmp.lt.s32.totalorder %s373_s19, %s373_s19 }
 0x221   :  { %354 = vst [vmem:[#allocation9] sm:$0xff] %v350_v19  ;;  %355 = vst [vmem:[#allocation9 + $0x8] sm:$0xff] %v351_v20  ;;  %p467_p10 = scmp.ne.s32.totalorder %s373_s19, %s466_s30  ;;  %p472_p12 = scmp.lt.s32.totalorder %s466_s30, %s466_s30 }
 0x223   :  { %p473_p13 = por %p472_p12, %p471_p11 }
 0x225   :  { %p474_p0 = pnand %p473_p13, %p467_p10 }
 0x227   :  { %477 = shalt.err (!%p474_p0)
}
 0x228   :  { %s478_s2 = scalar_lea.hbm %s665_s3, 256 }
 0x229   :  { %p479_p1 = scmp.ne.s32.totalorder %s665_s3, %s478_s2  ;;  %p482_p2 = scmp.lt.u32.totalorder %s478_s2, %s665_s3 }
 0x22b   :  { %p484_p3 = pnand %p482_p2, %p479_p1 }
 0x22d   :  { %487 = shalt.err (!%p484_p3)
}
 0x22e   :  { %375 = dma.vmem_to_hbm [thread:$0]  %s373_s19, 256, %s665_s3, [#allocation10]  }
 0x22f   :  { %492 = dma.done.wait [#allocation5], 256  }
 0x230   :  { %493 = vsyncadd [#allocation5], 4294967040 }
 0x231   :  { %494 = dma.done.wait [#allocation10], 256  }
 0x232   :  { %495 = vsyncadd [#allocation10], 4294967040 }
 0x233   :  { %382 = vsyncpa [#allocation4], 1 }
 0x234   :  { %383 = vsyncpa [#allocation7], 1 }
 0x235   :  { %384 = vsyncpa [#allocation5], 1 }
 0x236   :  { %385 = vsyncpa [#allocation10], 1 }

</bundles_post_ra>
